<compile_context>
chip_gen: v7x
topology: tpu7x:2x2x1
jax: 0.10.0
libtpu: 0.0.40
codegen_flags: <defaults>
</compile_context>

<pallas_src>
import jax
import jax.numpy as jnp
from jax import lax
from jax.experimental import pallas as pl
from jax.experimental.pallas import tpu as pltpu

_LANE = 128      # lane width (last-dim tiling)
_SUBLANE = 16    # bf16 rows per packed vreg -> batch-tile alignment


def _round_up(x, m):
    return ((x + m - 1) // m) * m


def _vmem_budget_bytes():
    """Per-kernel double-buffered working-set budget, generation-gated."""
    try:
        info = pltpu.get_tpu_info()
        cap = None
        for attr in ("vmem_capacity_bytes", "vmem_bytes", "vmem_size_bytes"):
            cap = getattr(info, attr, None)
            if cap:
                break
        if cap:
            # ~1/4 of physical VMEM: 32 MiB on 128 MiB chips (v5e/v6e),
            # 16 MiB on v7x's 64 MiB chip. Leaves headroom for Mosaic scratch.
            return int(min(int(cap) // 4, 32 << 20))
    except Exception:
        pass
    # Conservative fallback: fits v5e's 16 MiB default scoped VMEM.
    return 12 << 20


def _fwd_working_set(tm, D, tn):
    # double-buffered: bf16 feature tile + bf16 weight tile + f32 output tile
    return 2 * (tm * D * 2 + D * tn * 2 + tm * tn * 4)


def _pick_tn(C, D, budget, tm_cap=256):
    tn = min(_round_up(C, _LANE), 2048)

    def ok(t):
        prep_ws = 2 * D * t * (4 + 2)          # f32 in + bf16 out, double-buffered
        return _fwd_working_set(tm_cap, D, t) <= budget and prep_ws <= budget

    while tn > _LANE and not ok(tn):
        tn = max(_LANE, (tn // 2) // _LANE * _LANE)
    return tn


def _pick_tm(B, D, tn, budget):
    tm = min(_round_up(B, _SUBLANE), 512)

    def ws(t):
        prenorm_ws = 2 * t * D * (4 + 2)       # f32 in + bf16 out, double-buffered
        return max(_fwd_working_set(t, D, tn), prenorm_ws)

    while tm > _SUBLANE and ws(tm) > budget:
        tm = max(_SUBLANE, (tm // 2) // _SUBLANE * _SUBLANE)
    return tm


# ---------------------------------------------------------------------------
# One-shot weight prep: column L2-normalize, fold cos_temp, cast to bf16.
# Result is cached on the classifier object (invariant across forwards).
# ---------------------------------------------------------------------------
def _weight_prep_kernel(w_ref, temp_ref, out_ref):
    w = w_ref[...].astype(jnp.float32)                       # (D, tn)
    ssq = jnp.sum(w * w, axis=0, keepdims=True)              # (1, tn)
    # 1 / max(||w||, 1e-12) == rsqrt(max(||w||^2, 1e-24)); fold cos_temp here.
    inv = lax.rsqrt(jnp.maximum(ssq, 1e-24)) * temp_ref[0]
    out_ref[...] = (w * inv).astype(jnp.bfloat16)


def prepare_weight(weight, cos_temp, *, tn, Cp):
    """Returns cos_temp * normalize(weight, dim=0), padded to Cp columns, bf16."""
    D, C = weight.shape
    if Cp != C:
        weight = jnp.pad(weight, ((0, 0), (0, Cp - C)))       # zero cols stay zero
    cos_temp = jnp.asarray(cos_temp, jnp.float32).reshape((1,))
    return pl.pallas_call(
        _weight_prep_kernel,
        out_shape=jax.ShapeDtypeStruct((D, Cp), jnp.bfloat16),
        grid=(Cp // tn,),
        in_specs=[
            pl.BlockSpec((D, tn), lambda j: (0, j)),           # weight column tile
            pl.BlockSpec(memory_space=pltpu.MemorySpace.SMEM), # cos_temp scalar
        ],
        out_specs=pl.BlockSpec((D, tn), lambda j: (0, j)),
        compiler_params=pltpu.CompilerParams(
            dimension_semantics=("parallel",)),
    )(weight, cos_temp)


# ---------------------------------------------------------------------------
# Per-forward feature prenorm: row L2-normalize once, emit bf16.
# ---------------------------------------------------------------------------
def _feature_prenorm_kernel(f_ref, out_ref):
    f = f_ref[...].astype(jnp.float32)                        # (tm, D) f32 math
    ssq = jnp.sum(f * f, axis=1, keepdims=True)               # lane reduce (XLU)
    inv = lax.rsqrt(jnp.maximum(ssq, 1e-24))                  # EUP rsqrt
    out_ref[...] = (f * inv).astype(jnp.bfloat16)


def prenormalize_features(feature, *, tm):
    Bp, D = feature.shape
    return pl.pallas_call(
        _feature_prenorm_kernel,
        out_shape=jax.ShapeDtypeStruct((Bp, D), jnp.bfloat16),
        grid=(Bp // tm,),
        in_specs=[pl.BlockSpec((tm, D), lambda i: (i, 0))],
        out_specs=pl.BlockSpec((tm, D), lambda i: (i, 0)),
        compiler_params=pltpu.CompilerParams(
            dimension_semantics=("parallel",)),
    )(feature)


# ---------------------------------------------------------------------------
# Hot-path kernel: pure MXU matmul of prenormalized bf16 operands.
# ---------------------------------------------------------------------------
def _classifier_matmul_kernel(f_ref, w_ref, out_ref):
    out_ref[...] = jnp.dot(f_ref[...], w_ref[...],
                           preferred_element_type=jnp.float32)


class CosineClassifier:
    """Cosine-similarity classifier head.

    Weight prep (normalize + cos_temp fold + bf16) runs once at construction
    and is cached; forward() only prenormalizes the features and runs one
    tiled MXU matmul.
    """

    def __init__(self, weight, cos_temp, bias=None):
        self.D, self.C = weight.shape
        self.budget = _vmem_budget_bytes()
        self.tn = _pick_tn(self.C, self.D, self.budget)
        self.Cp = _round_up(self.C, self.tn)
        self.w_hat = prepare_weight(weight, cos_temp, tn=self.tn, Cp=self.Cp)
        self.bias = bias  # present in the PyTorch module but unused in forward()

    def __call__(self, feature):
        return self.forward(feature)

    def forward(self, feature):
        B, D = feature.shape
        assert D == self.D, "feature dim mismatch with weight"

        tn = self.tn
        tm = _pick_tm(B, D, tn, self.budget)
        Bp = _round_up(B, tm)
        ni, nj = Bp // tm, self.Cp // tn

        # v7x has 2 TensorCores: guarantee >=2 blocks along a parallel axis
        # when the grid would otherwise collapse to (1, 1).
        if ni == 1 and nj == 1 and tn % (2 * _LANE) == 0:
            tn //= 2
            nj = self.Cp // tn

        feat_p = feature if Bp == B else jnp.pad(feature, ((0, Bp - B), (0, 0)))
        f_hat = prenormalize_features(feat_p, tm=tm)          # (Bp, D) bf16

        # Grid loop order by operand size: keep the larger operand's block
        # index invariant along the inner axis so it is fetched once total;
        # the smaller operand streams instead.
        weight_bytes = self.D * self.Cp * 2
        feat_bytes = Bp * self.D * 2
        batch_innermost = (ni > 1 and
                           (weight_bytes + nj * feat_bytes) <
                           (ni * weight_bytes + feat_bytes))
        if batch_innermost:
            grid = (nj, ni)
            f_map = lambda j, i: (i, 0)
            w_map = lambda j, i: (0, j)
            o_map = lambda j, i: (i, j)
        else:
            grid = (ni, nj)
            f_map = lambda i, j: (i, 0)
            w_map = lambda i, j: (0, j)
            o_map = lambda i, j: (i, j)

        cost = pl.CostEstimate(
            flops=2 * Bp * self.D * self.Cp,
            transcendentals=0,
            bytes_accessed=feat_bytes + weight_bytes + Bp * self.Cp * 4)

        out_p = pl.pallas_call(
            _classifier_matmul_kernel,
            out_shape=jax.ShapeDtypeStruct((Bp, self.Cp), jnp.float32),
            grid=grid,
            in_specs=[
                pl.BlockSpec((tm, D), f_map),                 # bf16 feature tile
                pl.BlockSpec((D, tn), w_map),                 # cached bf16 weight tile
            ],
            out_specs=pl.BlockSpec((tm, tn), o_map),
            compiler_params=pltpu.CompilerParams(
                dimension_semantics=("parallel", "parallel"),
                vmem_limit_bytes=min(64 << 20, max(32 << 20, 3 * self.budget))),
            cost_estimate=cost,
        )(f_hat, self.w_hat)

        return out_p[:B, :self.C]


def cosine_classifier(feature, weight, cos_temp):
    """One-shot convenience wrapper.  For repeated forwards construct a
    CosineClassifier once (weight prep is cached) and call it per step."""
    return CosineClassifier(weight, cos_temp)(feature)


def reference(feature, weight, cos_temp):
    f = feature / jnp.maximum(
        jnp.linalg.norm(feature, axis=1, keepdims=True), 1e-12)
    w = weight / jnp.maximum(
        jnp.linalg.norm(weight, axis=0, keepdims=True), 1e-12)
    return jnp.asarray(cos_temp).reshape(-1)[0] * (f @ w)


if __name__ == "__main__":
    # Module hyper-params (synthetic, deterministic, small).
    feat_dim, nb_cls, cos_temp_val = 32, 16, 10.0
    batch = 8

    key = jax.random.PRNGKey(0)
    k_feat, k_w, k_b = jax.random.split(key, 3)

    feature = jax.random.normal(k_feat, (batch, feat_dim), dtype=jnp.float32)
    # self.weight = fc.weight.t()  ->  shape (feat_dim, nb_cls)
    weight = jax.random.normal(k_w, (feat_dim, nb_cls), dtype=jnp.float32) * 0.1
    # self.bias exists in the module but is not used in forward().
    bias = jax.random.normal(k_b, (nb_cls,), dtype=jnp.float32) * 0.01
    cos_temp = jnp.full((1,), cos_temp_val, dtype=jnp.float32)

    # Build once (weight prep cached), call forward.
    clf = CosineClassifier(weight, cos_temp, bias=bias)
    out = jax.block_until_ready(clf(feature))

    ref = reference(feature, weight, cos_temp)
    assert out.shape == (batch, nb_cls)
    # bf16 operands at the MXU dot (f32 accumulation): tolerance sized for that.
    assert jnp.allclose(out, ref, atol=5e-2, rtol=1e-2), "mismatch vs reference"

    print("KERNEL_OK")
</pallas_src>

<mosaic_0001>
module attributes {stable_mosaic.version = 11 : i64} {
  func.func @_weight_prep_kernel(%arg0: i32, %arg1: memref<32x128xf32, #tpu.memory_space<vmem>>, %arg2: memref<1xf32, #tpu.memory_space<smem>>, %arg3: memref<32x128xbf16, #tpu.memory_space<vmem>>) attributes {dimension_semantics = [#tpu.dimension_semantics<parallel>], iteration_bounds = array<i64: 1>, scalar_prefetch = 0 : i64, scratch_operands = 0 : i64, tpu.core_type = #tpu.core_type<tc>, window_params = [{transform_indices = @transform_0, window_bounds = array<i64: 32, 128>}, {transform_indices = @transform_1, window_bounds = array<i64: 1>}, {transform_indices = @transform_2, window_bounds = array<i64: 32, 128>}]} {
    %c0 = arith.constant 0 : index
    %c0_0 = arith.constant 0 : index
    %0 = vector.load %arg1[%c0, %c0_0] : memref<32x128xf32, #tpu.memory_space<vmem>>, vector<32x128xf32>
    %1 = arith.mulf %0, %0 : vector<32x128xf32>
    %cst = arith.constant dense<0.000000e+00> : vector<128xf32>
    %2 = vector.multi_reduction <add>, %1, %cst [0] : vector<32x128xf32> to vector<128xf32>
    %3 = vector.shape_cast %2 : vector<128xf32> to vector<1x128xf32>
    %cst_1 = arith.constant 1.000000e-24 : f32
    %4 = vector.broadcast %cst_1 : f32 to vector<1x128xf32>
    %5 = arith.maximumf %3, %4 : vector<1x128xf32>
    %6 = math.rsqrt %5 : vector<1x128xf32>
    %c0_2 = arith.constant 0 : index
    %7 = memref.load %arg2[%c0_2] : memref<1xf32, #tpu.memory_space<smem>>
    %8 = vector.broadcast %7 : f32 to vector<1x128xf32>
    %9 = arith.mulf %6, %8 : vector<1x128xf32>
    %10 = vector.broadcast %9 : vector<1x128xf32> to vector<32x128xf32>
    %11 = arith.mulf %0, %10 : vector<32x128xf32>
    %12 = arith.truncf %11 : vector<32x128xf32> to vector<32x128xbf16>
    %c0_3 = arith.constant 0 : index
    %c0_4 = arith.constant 0 : index
    %13 = vector.load %arg3[%c0_3, %c0_4] : memref<32x128xbf16, #tpu.memory_space<vmem>>, vector<32x128xbf16>
    tpu.vector_store %arg3[%c0_3, %c0_4], %12 {strides = array<i32>} : memref<32x128xbf16, #tpu.memory_space<vmem>>, vector<32x128xbf16>,
    return
  }
  func.func @transform_0(%arg0: i32) -> (i32, i32) {
    %c0_i32 = arith.constant 0 : i32
    %c0_i32_0 = arith.constant 0 : i32
    return %c0_i32, %arg0 : i32, i32
  }
  func.func @transform_1(%arg0: i32) -> i32 {
    %c0_i32 = arith.constant 0 : i32
    %c0_i32_0 = arith.constant 0 : i32
    return %c0_i32 : i32
  }
  func.func @transform_2(%arg0: i32) -> (i32, i32) {
    %c0_i32 = arith.constant 0 : i32
    %c0_i32_0 = arith.constant 0 : i32
    return %c0_i32, %arg0 : i32, i32
  }
}

</mosaic_0001>

<bundles_post_ra>
// kernel: tpu_custom_call.1
= control target key start
LH: loop header
LB: loop body
LE: loop exit
PB: predicated region body
PF: predicated region fallthrough
CT: control target
= control target key end

     0   :  { %8 = vsyncpa [#allocation4], 0  ;;  %s213_s0 = inlined_call_operand.hbm [shape: f32[32,128], index: 0, kind: input, shape index: {}]   ;;  %s214_s1 = inlined_call_operand.<no memory space> [shape: f32[1], index: 1, kind: input, shape index: {}]   ;;  %s215_s2 = inlined_call_operand.hbm [shape: bf16[32,128], index: 2, kind: output, shape index: {}]  }
   0x1   :  { %9 = vsyncpa [#allocation5], 0  ;;  %s165_s9 = smov [#allocation3]   ;;  %s117_s13 = scalar_lea.hbm %s213_s0, 512 }
   0x2   :  { %s15_s10 = sshll.u32 %s165_s9, 4  ;;  %p118_p0 = scmp.ne.s32.totalorder %s213_s0, %s117_s13  ;;  %s16_s10 = int_to_ptr.vmem [resolvable:$true] %s15_s10 }
   0x3   :  { %p121_p1 = scmp.lt.u32.totalorder %s117_s13, %s213_s0 }
   0x5   :  { %p123_p2 = pnand %p121_p1, %p118_p0 }
   0x7   :  { %126 = shalt.err (!%p123_p2)
}
   0x8   :  { %s127_s18 = scalar_lea.vmem %s16_s10, 512  ;;  %p132_p4 = scmp.lt.s32.totalorder %s16_s10, %s16_s10 }
   0x9   :  { %p128_p3 = scmp.ne.s32.totalorder %s16_s10, %s127_s18  ;;  %p133_p5 = scmp.lt.s32.totalorder %s127_s18, %s127_s18 }
   0xb   :  { %p134_p6 = por %p133_p5, %p132_p4 }
   0xd   :  { %p135_p7 = pnand %p134_p6, %p128_p3 }
   0xf   :  { %138 = shalt.err (!%p135_p7)
}
  0x10   :  { %s166_s19 = smov 128   ;;  %s167_s20 = smov 8  }
  0x11   :  { %21 = dma.hbm_to_vmem [thread:$0]  %s213_s0, 512, %s16_s10, [#allocation4], %s166_s19, %s166_s19, %s167_s20  }
  0x12   :  { %161 = dma.done.wait [#allocation4], 512  }
  0x13   :  { %162 = vsyncadd [#allocation4], 4294966784  ;;  %v27_v0 = vld [vmem:[#allocation3] sm:$0xff]  ;;  %v28_v1 = vld [vmem:[#allocation3 + $0x8] sm:$0xff]  ;;  %v47_v18 = vstv %s214_s1  ;;  %s168_s24 = smov [#allocation6]  }
  0x14   :  { %v29_v2 = vld [vmem:[#allocation3 + $0x10] sm:$0xff]  ;;  %v30_v3 = vld [vmem:[#allocation3 + $0x18] sm:$0xff]  ;;  %v31_v4 = vmul.f32 %v27_v0, %v27_v0  ;;  %v32_v5 = vmul.f32 %v28_v1, %v28_v1  ;;  %s78_s25 = sshll.u32 %s168_s24, 4  ;;  %s79_s25 = int_to_ptr.vmem [resolvable:$true] %s78_s25 }
  0x15   :  { %v33_v6 = vmul.f32 %v29_v2, %v29_v2  ;;  %v34_v7 = vmul.f32 %v30_v3, %v30_v3  ;;  %s139_s26 = scalar_lea.vmem %s79_s25, 256  ;;  %p144_p9 = scmp.lt.s32.totalorder %s79_s25, %s79_s25 }
  0x16   :  { %v35_v8 = vadd.f32 %v32_v5, %v31_v4  ;;  %p140_p8 = scmp.ne.s32.totalorder %s79_s25, %s139_s26  ;;  %p145_p10 = scmp.lt.s32.totalorder %s139_s26, %s139_s26 }
  0x18   :  { %v36_v9 = vadd.f32 %v35_v8, %v33_v6  ;;  %p146_p11 = por %p145_p10, %p144_p9 }
  0x1a   :  { %v37_v10 = vadd.f32 %v36_v9, %v34_v7  ;;  %p147_p12 = pnand %p146_p11, %p140_p8 }
  0x1c   :  { %v38_v11 = vrot.slane %v37_v10, 4 }
  0x1e   :  { %v39_v12 = vadd.f32 %v38_v11, %v37_v10 }
  0x20   :  { %v40_v13 = vrot.slane %v39_v12, 2 }
  0x22   :  { %v41_v14 = vadd.f32 %v40_v13, %v39_v12 }
  0x24   :  { %v42_v15 = vrot.slane %v41_v14, 1 }
  0x26   :  { %v43_v16 = vadd.f32 %v42_v15, %v41_v14 }
  0x28   :  { %v44_v17 = vmax.f32 %v43_v16, 1e-24 }
  0x2a   :  { %115 = vrsqrt.f32 %v44_v17 }
  0x34   :  { %v116_v19 = vpop.eup %115 }
  0x35   :  { %v48_v20 = vmul.f32 %v116_v19, %v47_v18 }
  0x37   :  { %v49_v21 = vmul.f32 %v48_v20, %v27_v0  ;;  %v50_v22 = vmul.f32 %v48_v20, %v28_v1  ;;  %v51_v23 = vmul.f32 %v48_v20, %v29_v2  ;;  %v52_v24 = vmul.f32 %v48_v20, %v30_v3 }
  0x39   :  { %v101_v25 = vpack.c.bf16 %v50_v22, %v49_v21  ;;  %v106_v26 = vpack.c.bf16 %v52_v24, %v51_v23 }
  0x3b   :  { %102 = vst [vmem:[#allocation6] sm:$0xff] %v101_v25   ;;  %108 = vst [vmem:[#allocation6 + $0x8] sm:$0xff] %v106_v26  }
  0x3c   :  { %150 = shalt.err (!%p147_p12)
}
  0x3d   :  { %s151_s28 = scalar_lea.hbm %s215_s2, 256 }
  0x3e   :  { %p152_p13 = scmp.ne.s32.totalorder %s215_s2, %s151_s28  ;;  %p155_p0 = scmp.lt.u32.totalorder %s151_s28, %s215_s2 }
  0x40   :  { %p157_p1 = pnand %p155_p0, %p152_p13 }
  0x42   :  { %160 = shalt.err (!%p157_p1)
}
  0x43   :  { %s169_s5 = smov 64   ;;  %s170_s6 = smov 4  }
  0x44   :  { %84 = dma.vmem_to_hbm [thread:$0]  %s79_s25, 256, %s215_s2, [#allocation5], %s169_s5, %s169_s5, %s170_s6  }
  0x45   :  { %163 = dma.done.wait [#allocation5], 256  }
  0x46   :  { %164 = vsyncadd [#allocation5], 4294967040 }
  0x47   :  { %88 = vsyncpa [#allocation4], 1 }
  0x48   :  { %89 = vsyncpa [#allocation5], 1 }

</bundles_post_ra>
